<compile_context>
chip_gen: v6e
topology: v6e:2x2x1
jax: 0.10.0
libtpu: 0.0.40
codegen_flags: <defaults>
</compile_context>

<pallas_src>
import numpy as np
import jax
import jax.numpy as jnp
from jax.experimental import pallas as pl
from jax.experimental.pallas import tpu as pltpu

EPS = 1e-5


def _fused_banded_weights(w_hwio, width):
    """(3,3,Cin,Cout) HWIO conv weights -> (3*W*Cin, W*Cout) bf16 matrix.

    Rows [dh*W*Cin : (dh+1)*W*Cin] hold the block-banded matrix for vertical
    tap dh: row-block wi / col-block wo carries w[dh, wi-wo+1] when
    |wi-wo| <= 1; missing blocks implement the W-edge zero padding."""
    _, _, cin, cout = w_hwio.shape
    big = np.zeros((3, width * cin, width * cout), np.float32)
    for dh in range(3):
        for wo in range(width):
            for dw in range(3):
                wi = wo + dw - 1
                if 0 <= wi < width:
                    big[dh, wi * cin:(wi + 1) * cin,
                        wo * cout:(wo + 1) * cout] = w_hwio[dh, dw]
    return jnp.asarray(big.reshape(3 * width * cin, width * cout),
                       dtype=jnp.bfloat16)        # bf16 MXU operands


def residual_block(x_nhwc, w1_hwio, w2_hwio, gamma1, beta1, gamma2, beta2):
    """Forward pass of ResidualBlock (stride=1, downsample=None, train-mode BN)."""
    N, H, W, C = x_nhwc.shape
    # downsample=None / stride=1 requires Cin == Cout.
    assert w1_hwio.shape == (3, 3, C, C) and w2_hwio.shape == (3, 3, C, C)
    WC = W * C
    WC3 = 3 * WC
    NH = N * H
    # Layout assumptions (avoid silent masked-store / wrong-padding paths).
    assert WC == 128, "merged W*C must equal the 128-lane vreg width"
    assert (W & (W - 1)) == 0, "roll-tree BN reduce requires W a power of two"
    assert H % 8 == 0, "H must be sublane-aligned (H % 16 keeps bf16 packing clean)"
    inv_m = 1.0 / float(N * H * W)   # BN batch-stat element count

    # ---- one-time host-side weight / constant prep (precompute in a real model) ----
    w1b = _fused_banded_weights(np.asarray(w1_hwio), W)     # (384, 128) bf16
    w2b = _fused_banded_weights(np.asarray(w2_hwio), W)
    g1t = jnp.tile(jnp.reshape(gamma1, (1, C)), (1, W)).astype(jnp.float32)
    b1t = jnp.tile(jnp.reshape(beta1, (1, C)), (1, W)).astype(jnp.float32)
    g2t = jnp.tile(jnp.reshape(gamma2, (1, C)), (1, W)).astype(jnp.float32)
    b2t = jnp.tile(jnp.reshape(beta2, (1, C)), (1, W)).astype(jnp.float32)

    x_m = x_nhwc.reshape(N, H, WC)   # lane-dense merged layout (free reshape)

    def kernel(x_ref, w1_ref, w2_ref, g1_ref, b1_ref, g2_ref, b2_ref,
               out_ref, lhs_ref):
        x = x_ref[...]                                   # (N, H, WC) f32 residual
        zrow = jnp.zeros((N, 1, WC), jnp.bfloat16)

        def fill_lhs(a_bf):
            # Build the fused (N, H, 3*WC) bf16 LHS: lane groups hold the
            # h-1 / h / h+1 row windows; only the H-halo rows are zeroed.
            lhs_ref[:, :, WC:2 * WC] = a_bf                      # middle tap
            lhs_ref[:, 0:1, 0:WC] = zrow                         # top halo
            lhs_ref[:, 1:H, 0:WC] = a_bf[:, 0:H - 1, :]          # rows h-1
            lhs_ref[:, 0:H - 1, 2 * WC:WC3] = a_bf[:, 1:H, :]    # rows h+1
            lhs_ref[:, H - 1:H, 2 * WC:WC3] = zrow               # bottom halo

        def conv(w_ref):
            # single K=384 bf16 MXU matmul per conv, f32 accumulation
            lhs = lhs_ref[...].reshape(NH, WC3)
            return jnp.dot(lhs, w_ref[...],
                           preferred_element_type=jnp.float32)   # (NH, WC) f32

        def batchnorm(a, g_t, b_t):
            # train-mode BN: exact f32 one-pass stats; the fold over W and the
            # broadcast back across lanes is a lane-roll tree reduce (XLU).
            s = jnp.sum(a, axis=0, keepdims=True)                # (1, WC)
            ss = jnp.sum(a * a, axis=0, keepdims=True)           # (1, WC)
            k = C
            while k < WC:                                        # shifts C,2C,4C,...
                s = s + pltpu.roll(s, shift=k, axis=1)
                ss = ss + pltpu.roll(ss, shift=k, axis=1)
                k *= 2
            mean = s * inv_m
            var = ss * inv_m - mean * mean                       # biased variance
            scale = g_t * jax.lax.rsqrt(var + EPS)
            shift = b_t - mean * scale
            return a * scale + shift

        # conv1 -> BN -> ReLU   (conv bias is cancelled by the BN mean)
        fill_lhs(x.astype(jnp.bfloat16))
        y1 = jnp.maximum(batchnorm(conv(w1_ref), g1_ref[...], b1_ref[...]), 0.0)

        # conv2 -> BN -> +residual -> ReLU, stored lane-dense (unmasked vst)
        fill_lhs(y1.reshape(N, H, WC).astype(jnp.bfloat16))
        z = batchnorm(conv(w2_ref), g2_ref[...], b2_ref[...])
        out = jnp.maximum(z + x.reshape(NH, WC), 0.0)
        out_ref[...] = out.reshape(N, H, WC)

    vmem = pl.BlockSpec(memory_space=pltpu.MemorySpace.VMEM)
    out = pl.pallas_call(
        kernel,
        out_shape=jax.ShapeDtypeStruct((N, H, WC), jnp.float32),
        in_specs=[vmem] * 7,
        out_specs=vmem,
        # single bf16 scratch reused for both convs' fused-K LHS (~24 KiB here)
        scratch_shapes=[pltpu.VMEM((N, H, WC3), jnp.bfloat16)],
    )(x_m, w1b, w2b, g1t, b1t, g2t, b2t)
    return out.reshape(N, H, W, C)


def make_params(key, cin, cout):
    """layer_init: orthogonal(sqrt(2)) conv weights, zero bias; fresh BN (g=1, b=0)."""
    k1, k2 = jax.random.split(key)
    ortho = jax.nn.initializers.orthogonal(scale=float(np.sqrt(2)))
    # PyTorch orthogonal_ flattens the (Cout, Cin, 3, 3) weight to (Cout, Cin*9).
    w1_oihw = ortho(k1, (cout, cin * 9), jnp.float32).reshape(cout, cin, 3, 3)
    w2_oihw = ortho(k2, (cout, cout * 9), jnp.float32).reshape(cout, cout, 3, 3)
    w1_hwio = jnp.transpose(w1_oihw, (2, 3, 1, 0))   # (KH, KW, Cin, Cout)
    w2_hwio = jnp.transpose(w2_oihw, (2, 3, 1, 0))
    gamma1 = jnp.ones((cout,), jnp.float32)
    beta1 = jnp.zeros((cout,), jnp.float32)
    gamma2 = jnp.ones((cout,), jnp.float32)
    beta2 = jnp.zeros((cout,), jnp.float32)
    return w1_hwio, w2_hwio, gamma1, beta1, gamma2, beta2


def ref_forward(x_nhwc, w1_hwio, w2_hwio, g1, b1, g2, b2):
    """Pure-JAX f32 reference of the PyTorch forward (train-mode BN)."""
    dn = ('NHWC', 'HWIO', 'NHWC')
    y = jax.lax.conv_general_dilated(x_nhwc, w1_hwio, (1, 1), 'SAME',
                                     dimension_numbers=dn)
    m = y.mean(axis=(0, 1, 2))
    v = ((y - m) ** 2).mean(axis=(0, 1, 2))
    y = jnp.maximum((y - m) * jax.lax.rsqrt(v + EPS) * g1 + b1, 0.0)
    z = jax.lax.conv_general_dilated(y, w2_hwio, (1, 1), 'SAME',
                                     dimension_numbers=dn)
    m = z.mean(axis=(0, 1, 2))
    v = ((z - m) ** 2).mean(axis=(0, 1, 2))
    z = (z - m) * jax.lax.rsqrt(v + EPS) * g2 + b2
    return jnp.maximum(z + x_nhwc, 0.0)


if __name__ == "__main__":
    key = jax.random.PRNGKey(0)
    kx, kp = jax.random.split(key)

    # PyTorch-style NCHW input; downsample=None requires Cin == Cout.
    # W*C = 16*8 = 128 so merged activations map exactly onto the 128 lanes.
    N, C, H, W = 2, 8, 16, 16
    x_nchw = jax.random.normal(kx, (N, C, H, W), jnp.float32)
    x_nhwc = jnp.transpose(x_nchw, (0, 2, 3, 1))

    w1_hwio, w2_hwio, g1, b1, g2, b2 = make_params(kp, C, C)

    out_nhwc = residual_block(x_nhwc, w1_hwio, w2_hwio, g1, b1, g2, b2)
    out_nhwc = jax.block_until_ready(out_nhwc)
    out_nchw = jnp.transpose(out_nhwc, (0, 3, 1, 2))   # back to PyTorch layout

    ref = ref_forward(x_nhwc, w1_hwio, w2_hwio, g1, b1, g2, b2)
    # bf16 MXU operands (f32 accumulation, exact-f32 BN stats) => bf16 tolerance.
    np.testing.assert_allclose(np.asarray(out_nhwc), np.asarray(ref),
                               rtol=2e-2, atol=2e-2)
    print("KERNEL_OK")
</pallas_src>

<mosaic_0001>
module attributes {stable_mosaic.version = 11 : i64} {
  func.func @kernel(%arg0: memref<2x16x128xf32, #tpu.memory_space<vmem>>, %arg1: memref<384x128xbf16, #tpu.memory_space<vmem>>, %arg2: memref<384x128xbf16, #tpu.memory_space<vmem>>, %arg3: memref<1x128xf32, #tpu.memory_space<vmem>>, %arg4: memref<1x128xf32, #tpu.memory_space<vmem>>, %arg5: memref<1x128xf32, #tpu.memory_space<vmem>>, %arg6: memref<1x128xf32, #tpu.memory_space<vmem>>, %arg7: memref<2x16x128xf32, #tpu.memory_space<vmem>>, %arg8: memref<2x16x384xbf16, #tpu.memory_space<vmem>>) attributes {dimension_semantics = [], scalar_prefetch = 0 : i64, scratch_operands = 1 : i64, tpu.core_type = #tpu.core_type<tc>} {
    %c0 = arith.constant 0 : index
    %c0_0 = arith.constant 0 : index
    %c0_1 = arith.constant 0 : index
    %0 = vector.load %arg0[%c0, %c0_0, %c0_1] : memref<2x16x128xf32, #tpu.memory_space<vmem>>, vector<2x16x128xf32>
    %cst = arith.constant 0.000000e+00 : bf16
    %1 = vector.broadcast %cst : bf16 to vector<2x1x128xbf16>
    %2 = arith.truncf %0 : vector<2x16x128xf32> to vector<2x16x128xbf16>
    %c0_2 = arith.constant 0 : index
    %c0_3 = arith.constant 0 : index
    %c128 = arith.constant 128 : index
    %3 = vector.load %arg8[%c0_2, %c0_3, %c128] : memref<2x16x384xbf16, #tpu.memory_space<vmem>>, vector<2x16x128xbf16>
    tpu.vector_store %arg8[%c0_2, %c0_3, %c128], %2 {strides = array<i32>} : memref<2x16x384xbf16, #tpu.memory_space<vmem>>, vector<2x16x128xbf16>,
    %c0_4 = arith.constant 0 : index
    %c0_5 = arith.constant 0 : index
    %c0_6 = arith.constant 0 : index
    %4 = vector.load %arg8[%c0_4, %c0_5, %c0_6] : memref<2x16x384xbf16, #tpu.memory_space<vmem>>, vector<2x1x128xbf16>
    tpu.vector_store %arg8[%c0_4, %c0_5, %c0_6], %1 {strides = array<i32>} : memref<2x16x384xbf16, #tpu.memory_space<vmem>>, vector<2x1x128xbf16>,
    %5 = vector.extract_strided_slice %2 {offsets = [0, 0, 0], sizes = [2, 15, 128], strides = [1, 1, 1]} : vector<2x16x128xbf16> to vector<2x15x128xbf16>
    %c0_7 = arith.constant 0 : index
    %c1 = arith.constant 1 : index
    %c0_8 = arith.constant 0 : index
    %6 = vector.load %arg8[%c0_7, %c1, %c0_8] : memref<2x16x384xbf16, #tpu.memory_space<vmem>>, vector<2x15x128xbf16>
    tpu.vector_store %arg8[%c0_7, %c1, %c0_8], %5 {strides = array<i32>} : memref<2x16x384xbf16, #tpu.memory_space<vmem>>, vector<2x15x128xbf16>,
    %7 = vector.extract_strided_slice %2 {offsets = [0, 1, 0], sizes = [2, 15, 128], strides = [1, 1, 1]} : vector<2x16x128xbf16> to vector<2x15x128xbf16>
    %c0_9 = arith.constant 0 : index
    %c0_10 = arith.constant 0 : index
    %c256 = arith.constant 256 : index
    %8 = vector.load %arg8[%c0_9, %c0_10, %c256] : memref<2x16x384xbf16, #tpu.memory_space<vmem>>, vector<2x15x128xbf16>
    tpu.vector_store %arg8[%c0_9, %c0_10, %c256], %7 {strides = array<i32>} : memref<2x16x384xbf16, #tpu.memory_space<vmem>>, vector<2x15x128xbf16>,
    %c0_11 = arith.constant 0 : index
    %c15 = arith.constant 15 : index
    %c256_12 = arith.constant 256 : index
    %9 = vector.load %arg8[%c0_11, %c15, %c256_12] : memref<2x16x384xbf16, #tpu.memory_space<vmem>>, vector<2x1x128xbf16>
    tpu.vector_store %arg8[%c0_11, %c15, %c256_12], %1 {strides = array<i32>} : memref<2x16x384xbf16, #tpu.memory_space<vmem>>, vector<2x1x128xbf16>,
    %c0_13 = arith.constant 0 : index
    %c0_14 = arith.constant 0 : index
    %c0_15 = arith.constant 0 : index
    %10 = vector.load %arg8[%c0_13, %c0_14, %c0_15] : memref<2x16x384xbf16, #tpu.memory_space<vmem>>, vector<2x16x384xbf16>
    %11 = vector.shape_cast %10 : vector<2x16x384xbf16> to vector<32x384xbf16>
    %c0_16 = arith.constant 0 : index
    %c0_17 = arith.constant 0 : index
    %12 = vector.load %arg1[%c0_16, %c0_17] : memref<384x128xbf16, #tpu.memory_space<vmem>>, vector<384x128xbf16>
    %cst_18 = arith.constant dense<0.000000e+00> : vector<32x128xf32>
    %13 = tpu.matmul %11, %12, %cst_18 {dimension_numbers = #tpu.dot_dimension_numbers<[1], [0], [0], [1], [0, 0, 1, 1], [], []>} : vector<32x384xbf16>, vector<384x128xbf16>, vector<32x128xf32> -> vector<32x128xf32>
    %c0_19 = arith.constant 0 : index
    %c0_20 = arith.constant 0 : index
    %14 = vector.load %arg3[%c0_19, %c0_20] : memref<1x128xf32, #tpu.memory_space<vmem>>, vector<1x128xf32>
    %c0_21 = arith.constant 0 : index
    %c0_22 = arith.constant 0 : index
    %15 = vector.load %arg4[%c0_21, %c0_22] : memref<1x128xf32, #tpu.memory_space<vmem>>, vector<1x128xf32>
    %cst_23 = arith.constant dense<0.000000e+00> : vector<128xf32>
    %16 = vector.multi_reduction <add>, %13, %cst_23 [0] : vector<32x128xf32> to vector<128xf32>
    %17 = vector.shape_cast %16 : vector<128xf32> to vector<1x128xf32>
    %18 = arith.mulf %13, %13 : vector<32x128xf32>
    %cst_24 = arith.constant dense<0.000000e+00> : vector<128xf32>
    %19 = vector.multi_reduction <add>, %18, %cst_24 [0] : vector<32x128xf32> to vector<128xf32>
    %20 = vector.shape_cast %19 : vector<128xf32> to vector<1x128xf32>
    %c8_i32 = arith.constant 8 : i32
    %21 = tpu.dynamic_rotate %17 by %c8_i32 dim 1 : vector<1x128xf32>, i32 -> vector<1x128xf32>
    %22 = arith.addf %17, %21 : vector<1x128xf32>
    %c8_i32_25 = arith.constant 8 : i32
    %23 = tpu.dynamic_rotate %20 by %c8_i32_25 dim 1 : vector<1x128xf32>, i32 -> vector<1x128xf32>
    %24 = arith.addf %20, %23 : vector<1x128xf32>
    %c16_i32 = arith.constant 16 : i32
    %25 = tpu.dynamic_rotate %22 by %c16_i32 dim 1 : vector<1x128xf32>, i32 -> vector<1x128xf32>
    %26 = arith.addf %22, %25 : vector<1x128xf32>
    %c16_i32_26 = arith.constant 16 : i32
    %27 = tpu.dynamic_rotate %24 by %c16_i32_26 dim 1 : vector<1x128xf32>, i32 -> vector<1x128xf32>
    %28 = arith.addf %24, %27 : vector<1x128xf32>
    %c32_i32 = arith.constant 32 : i32
    %29 = tpu.dynamic_rotate %26 by %c32_i32 dim 1 : vector<1x128xf32>, i32 -> vector<1x128xf32>
    %30 = arith.addf %26, %29 : vector<1x128xf32>
    %c32_i32_27 = arith.constant 32 : i32
    %31 = tpu.dynamic_rotate %28 by %c32_i32_27 dim 1 : vector<1x128xf32>, i32 -> vector<1x128xf32>
    %32 = arith.addf %28, %31 : vector<1x128xf32>
    %c64_i32 = arith.constant 64 : i32
    %33 = tpu.dynamic_rotate %30 by %c64_i32 dim 1 : vector<1x128xf32>, i32 -> vector<1x128xf32>
    %34 = arith.addf %30, %33 : vector<1x128xf32>
    %c64_i32_28 = arith.constant 64 : i32
    %35 = tpu.dynamic_rotate %32 by %c64_i32_28 dim 1 : vector<1x128xf32>, i32 -> vector<1x128xf32>
    %36 = arith.addf %32, %35 : vector<1x128xf32>
    %cst_29 = arith.constant 0.001953125 : f32
    %37 = vector.broadcast %cst_29 : f32 to vector<1x128xf32>
    %38 = arith.mulf %34, %37 : vector<1x128xf32>
    %cst_30 = arith.constant 0.001953125 : f32
    %39 = vector.broadcast %cst_30 : f32 to vector<1x128xf32>
    %40 = arith.mulf %36, %39 : vector<1x128xf32>
    %41 = arith.mulf %38, %38 : vector<1x128xf32>
    %42 = arith.subf %40, %41 : vector<1x128xf32>
    %cst_31 = arith.constant 9.99999974E-6 : f32
    %43 = vector.broadcast %cst_31 : f32 to vector<1x128xf32>
    %44 = arith.addf %42, %43 : vector<1x128xf32>
    %45 = math.rsqrt %44 : vector<1x128xf32>
    %46 = arith.mulf %14, %45 : vector<1x128xf32>
    %47 = arith.mulf %38, %46 : vector<1x128xf32>
    %48 = arith.subf %15, %47 : vector<1x128xf32>
    %49 = vector.broadcast %46 : vector<1x128xf32> to vector<32x128xf32>
    %50 = arith.mulf %13, %49 : vector<32x128xf32>
    %51 = vector.broadcast %48 : vector<1x128xf32> to vector<32x128xf32>
    %52 = arith.addf %50, %51 : vector<32x128xf32>
    %cst_32 = arith.constant 0.000000e+00 : f32
    %53 = vector.broadcast %cst_32 : f32 to vector<32x128xf32>
    %54 = arith.maximumf %52, %53 : vector<32x128xf32>
    %55 = vector.shape_cast %54 : vector<32x128xf32> to vector<2x16x128xf32>
    %56 = arith.truncf %55 : vector<2x16x128xf32> to vector<2x16x128xbf16>
    %c0_33 = arith.constant 0 : index
    %c0_34 = arith.constant 0 : index
    %c128_35 = arith.constant 128 : index
    %57 = vector.load %arg8[%c0_33, %c0_34, %c128_35] : memref<2x16x384xbf16, #tpu.memory_space<vmem>>, vector<2x16x128xbf16>
    tpu.vector_store %arg8[%c0_33, %c0_34, %c128_35], %56 {strides = array<i32>} : memref<2x16x384xbf16, #tpu.memory_space<vmem>>, vector<2x16x128xbf16>,
    %c0_36 = arith.constant 0 : index
    %c0_37 = arith.constant 0 : index
    %c0_38 = arith.constant 0 : index
    %58 = vector.load %arg8[%c0_36, %c0_37, %c0_38] : memref<2x16x384xbf16, #tpu.memory_space<vmem>>, vector<2x1x128xbf16>
    tpu.vector_store %arg8[%c0_36, %c0_37, %c0_38], %1 {strides = array<i32>} : memref<2x16x384xbf16, #tpu.memory_space<vmem>>, vector<2x1x128xbf16>,
    %59 = vector.extract_strided_slice %56 {offsets = [0, 0, 0], sizes = [2, 15, 128], strides = [1, 1, 1]} : vector<2x16x128xbf16> to vector<2x15x128xbf16>
    %c0_39 = arith.constant 0 : index
    %c1_40 = arith.constant 1 : index
    %c0_41 = arith.constant 0 : index
    %60 = vector.load %arg8[%c0_39, %c1_40, %c0_41] : memref<2x16x384xbf16, #tpu.memory_space<vmem>>, vector<2x15x128xbf16>
    tpu.vector_store %arg8[%c0_39, %c1_40, %c0_41], %59 {strides = array<i32>} : memref<2x16x384xbf16, #tpu.memory_space<vmem>>, vector<2x15x128xbf16>,
    %61 = vector.extract_strided_slice %56 {offsets = [0, 1, 0], sizes = [2, 15, 128], strides = [1, 1, 1]} : vector<2x16x128xbf16> to vector<2x15x128xbf16>
    %c0_42 = arith.constant 0 : index
    %c0_43 = arith.constant 0 : index
    %c256_44 = arith.constant 256 : index
    %62 = vector.load %arg8[%c0_42, %c0_43, %c256_44] : memref<2x16x384xbf16, #tpu.memory_space<vmem>>, vector<2x15x128xbf16>
    tpu.vector_store %arg8[%c0_42, %c0_43, %c256_44], %61 {strides = array<i32>} : memref<2x16x384xbf16, #tpu.memory_space<vmem>>, vector<2x15x128xbf16>,
    %c0_45 = arith.constant 0 : index
    %c15_46 = arith.constant 15 : index
    %c256_47 = arith.constant 256 : index
    %63 = vector.load %arg8[%c0_45, %c15_46, %c256_47] : memref<2x16x384xbf16, #tpu.memory_space<vmem>>, vector<2x1x128xbf16>
    tpu.vector_store %arg8[%c0_45, %c15_46, %c256_47], %1 {strides = array<i32>} : memref<2x16x384xbf16, #tpu.memory_space<vmem>>, vector<2x1x128xbf16>,
    %c0_48 = arith.constant 0 : index
    %c0_49 = arith.constant 0 : index
    %c0_50 = arith.constant 0 : index
    %64 = vector.load %arg8[%c0_48, %c0_49, %c0_50] : memref<2x16x384xbf16, #tpu.memory_space<vmem>>, vector<2x16x384xbf16>
    %65 = vector.shape_cast %64 : vector<2x16x384xbf16> to vector<32x384xbf16>
    %c0_51 = arith.constant 0 : index
    %c0_52 = arith.constant 0 : index
    %66 = vector.load %arg2[%c0_51, %c0_52] : memref<384x128xbf16, #tpu.memory_space<vmem>>, vector<384x128xbf16>
    %cst_53 = arith.constant dense<0.000000e+00> : vector<32x128xf32>
    %67 = tpu.matmul %65, %66, %cst_53 {dimension_numbers = #tpu.dot_dimension_numbers<[1], [0], [0], [1], [0, 0, 1, 1], [], []>} : vector<32x384xbf16>, vector<384x128xbf16>, vector<32x128xf32> -> vector<32x128xf32>
    %c0_54 = arith.constant 0 : index
    %c0_55 = arith.constant 0 : index
    %68 = vector.load %arg5[%c0_54, %c0_55] : memref<1x128xf32, #tpu.memory_space<vmem>>, vector<1x128xf32>
    %c0_56 = arith.constant 0 : index
    %c0_57 = arith.constant 0 : index
    %69 = vector.load %arg6[%c0_56, %c0_57] : memref<1x128xf32, #tpu.memory_space<vmem>>, vector<1x128xf32>
    %cst_58 = arith.constant dense<0.000000e+00> : vector<128xf32>
    %70 = vector.multi_reduction <add>, %67, %cst_58 [0] : vector<32x128xf32> to vector<128xf32>
    %71 = vector.shape_cast %70 : vector<128xf32> to vector<1x128xf32>
    %72 = arith.mulf %67, %67 : vector<32x128xf32>
    %cst_59 = arith.constant dense<0.000000e+00> : vector<128xf32>
    %73 = vector.multi_reduction <add>, %72, %cst_59 [0] : vector<32x128xf32> to vector<128xf32>
    %74 = vector.shape_cast %73 : vector<128xf32> to vector<1x128xf32>
    %c8_i32_60 = arith.constant 8 : i32
    %75 = tpu.dynamic_rotate %71 by %c8_i32_60 dim 1 : vector<1x128xf32>, i32 -> vector<1x128xf32>
    %76 = arith.addf %71, %75 : vector<1x128xf32>
    %c8_i32_61 = arith.constant 8 : i32
    %77 = tpu.dynamic_rotate %74 by %c8_i32_61 dim 1 : vector<1x128xf32>, i32 -> vector<1x128xf32>
    %78 = arith.addf %74, %77 : vector<1x128xf32>
    %c16_i32_62 = arith.constant 16 : i32
    %79 = tpu.dynamic_rotate %76 by %c16_i32_62 dim 1 : vector<1x128xf32>, i32 -> vector<1x128xf32>
    %80 = arith.addf %76, %79 : vector<1x128xf32>
    %c16_i32_63 = arith.constant 16 : i32
    %81 = tpu.dynamic_rotate %78 by %c16_i32_63 dim 1 : vector<1x128xf32>, i32 -> vector<1x128xf32>
    %82 = arith.addf %78, %81 : vector<1x128xf32>
    %c32_i32_64 = arith.constant 32 : i32
    %83 = tpu.dynamic_rotate %80 by %c32_i32_64 dim 1 : vector<1x128xf32>, i32 -> vector<1x128xf32>
    %84 = arith.addf %80, %83 : vector<1x128xf32>
    %c32_i32_65 = arith.constant 32 : i32
    %85 = tpu.dynamic_rotate %82 by %c32_i32_65 dim 1 : vector<1x128xf32>, i32 -> vector<1x128xf32>
    %86 = arith.addf %82, %85 : vector<1x128xf32>
    %c64_i32_66 = arith.constant 64 : i32
    %87 = tpu.dynamic_rotate %84 by %c64_i32_66 dim 1 : vector<1x128xf32>, i32 -> vector<1x128xf32>
    %88 = arith.addf %84, %87 : vector<1x128xf32>
    %c64_i32_67 = arith.constant 64 : i32
    %89 = tpu.dynamic_rotate %86 by %c64_i32_67 dim 1 : vector<1x128xf32>, i32 -> vector<1x128xf32>
    %90 = arith.addf %86, %89 : vector<1x128xf32>
    %cst_68 = arith.constant 0.001953125 : f32
    %91 = vector.broadcast %cst_68 : f32 to vector<1x128xf32>
    %92 = arith.mulf %88, %91 : vector<1x128xf32>
    %cst_69 = arith.constant 0.001953125 : f32
    %93 = vector.broadcast %cst_69 : f32 to vector<1x128xf32>
    %94 = arith.mulf %90, %93 : vector<1x128xf32>
    %95 = arith.mulf %92, %92 : vector<1x128xf32>
    %96 = arith.subf %94, %95 : vector<1x128xf32>
    %cst_70 = arith.constant 9.99999974E-6 : f32
    %97 = vector.broadcast %cst_70 : f32 to vector<1x128xf32>
    %98 = arith.addf %96, %97 : vector<1x128xf32>
    %99 = math.rsqrt %98 : vector<1x128xf32>
    %100 = arith.mulf %68, %99 : vector<1x128xf32>
    %101 = arith.mulf %92, %100 : vector<1x128xf32>
    %102 = arith.subf %69, %101 : vector<1x128xf32>
    %103 = vector.broadcast %100 : vector<1x128xf32> to vector<32x128xf32>
    %104 = arith.mulf %67, %103 : vector<32x128xf32>
    %105 = vector.broadcast %102 : vector<1x128xf32> to vector<32x128xf32>
    %106 = arith.addf %104, %105 : vector<32x128xf32>
    %107 = vector.shape_cast %0 : vector<2x16x128xf32> to vector<32x128xf32>
    %108 = arith.addf %106, %107 : vector<32x128xf32>
    %cst_71 = arith.constant 0.000000e+00 : f32
    %109 = vector.broadcast %cst_71 : f32 to vector<32x128xf32>
    %110 = arith.maximumf %108, %109 : vector<32x128xf32>
    %111 = vector.shape_cast %110 : vector<32x128xf32> to vector<2x16x128xf32>
    %c0_72 = arith.constant 0 : index
    %c0_73 = arith.constant 0 : index
    %c0_74 = arith.constant 0 : index
    %112 = vector.load %arg7[%c0_72, %c0_73, %c0_74] : memref<2x16x128xf32, #tpu.memory_space<vmem>>, vector<2x16x128xf32>
    tpu.vector_store %arg7[%c0_72, %c0_73, %c0_74], %111 {strides = array<i32>} : memref<2x16x128xf32, #tpu.memory_space<vmem>>, vector<2x16x128xf32>,
    return
  }
}

</mosaic_0001>

<bundles_post_ra>
// kernel: tpu_custom_call.1
= control target key start
LH: loop header
LB: loop body
LE: loop exit
PB: predicated region body
PF: predicated region fallthrough
CT: control target
= control target key end

     0   :  { %12 = vsyncpa [#allocation4], 0  ;;  %s1751_s0 = inlined_call_operand.hbm [shape: f32[2,16,128], index: 0, kind: input, shape index: {}]   ;;  %s1752_s1 = inlined_call_operand.hbm [shape: bf16[384,128], index: 1, kind: input, shape index: {}]   ;;  %s1753_s2 = inlined_call_operand.hbm [shape: bf16[384,128], index: 2, kind: input, shape index: {}]   ;;  %s1754_s3 = inlined_call_operand.vmem [shape: f32[1,128], index: 3, kind: input, shape index: {}]   ;;  %s1755_s4 = inlined_call_operand.vmem [shape: f32[1,128], index: 4, kind: input, shape index: {}]   ;;  %s1756_s5 = inlined_call_operand.vmem [shape: f32[1,128], index: 5, kind: input, shape index: {}]   ;;  %s1757_s6 = inlined_call_operand.vmem [shape: f32[1,128], index: 6, kind: input, shape index: {}]   ;;  %s1758_s7 = inlined_call_operand.hbm [shape: f32[2,16,128], index: 7, kind: output, shape index: {}]  }
   0x1   :  { %13 = vsyncpa [#allocation7], 0 }
   0x2   :  { %14 = vsyncpa [#allocation5], 0  ;;  %s1502_s24 = smov [#allocation6]  }
   0x3   :  { %s32_s25 = sshll.u32 %s1502_s24, 4  ;;  %s33_s25 = int_to_ptr.vmem [resolvable:$true] %s32_s25 }
   0x4   :  { %s1424_s26 = scalar_lea.vmem %s33_s25, 3072  ;;  %p1429_p1 = scmp.lt.s32.totalorder %s33_s25, %s33_s25 }
   0x5   :  { %p1425_p0 = scmp.ne.s32.totalorder %s33_s25, %s1424_s26  ;;  %p1430_p2 = scmp.lt.s32.totalorder %s1424_s26, %s1424_s26 }
   0x7   :  { %p1431_p3 = por %p1430_p2, %p1429_p1 }
   0x9   :  { %p1432_p4 = pnand %p1431_p3, %p1425_p0 }
   0xb   :  { %1435 = shalt.err (!%p1432_p4)
}
   0xc   :  { %s1503_s27 = smov 64   ;;  %s1504_s28 = smov 4  }
   0xd   :  { %38 = dma.hbm_to_vmem [thread:$0]  %s1752_s1, 3072, %s33_s25, [#allocation7], %s1503_s27, %s1503_s27, %s1504_s28  }
   0xe   :  { %s1505_s8 = smov [#allocation3]  }
   0xf   :  { %s20_s9 = sshll.u32 %s1505_s8, 4  ;;  %s21_s9 = int_to_ptr.vmem [resolvable:$true] %s20_s9 }
  0x10   :  { %s1444_s10 = scalar_lea.vmem %s21_s9, 512  ;;  %p1449_p6 = scmp.lt.s32.totalorder %s21_s9, %s21_s9 }
  0x11   :  { %p1445_p5 = scmp.ne.s32.totalorder %s21_s9, %s1444_s10  ;;  %p1450_p7 = scmp.lt.s32.totalorder %s1444_s10, %s1444_s10 }
  0x13   :  { %p1451_p8 = por %p1450_p7, %p1449_p6 }
  0x15   :  { %p1452_p9 = pnand %p1451_p8, %p1445_p5 }
  0x17   :  { %1455 = shalt.err (!%p1452_p9)
}
  0x18   :  { %s1506_s11 = smov 128   ;;  %s1507_s12 = smov 8  }
  0x19   :  { %26 = dma.hbm_to_vmem [thread:$0]  %s1751_s0, 512, %s21_s9, [#allocation4], %s1506_s11, %s1506_s11, %s1507_s12  }
  0x1a   :  { %s1508_s1 = smov [#allocation8]  }
  0x1b   :  { %s44_s15 = sshll.u32 %s1508_s1, 4  ;;  %s45_s15 = int_to_ptr.vmem [resolvable:$true] %s44_s15 }
  0x1c   :  { %s1464_s16 = scalar_lea.vmem %s45_s15, 3072  ;;  %p1469_p11 = scmp.lt.s32.totalorder %s45_s15, %s45_s15 }
  0x1d   :  { %p1465_p10 = scmp.ne.s32.totalorder %s45_s15, %s1464_s16  ;;  %p1470_p12 = scmp.lt.s32.totalorder %s1464_s16, %s1464_s16 }
  0x1f   :  { %p1471_p13 = por %p1470_p12, %p1469_p11 }
  0x21   :  { %p1472_p0 = pnand %p1471_p13, %p1465_p10 }
  0x23   :  { %1475 = shalt.err (!%p1472_p0)
}
  0x24   :  { %50 = dma.hbm_to_vmem [thread:$0]  %s1753_s2, 3072, %s45_s15, [#allocation7], %s1503_s27, %s1503_s27, %s1504_s28  }
  0x25   :  { %1496 = dma.done.wait [#allocation4], 512  }
  0x26   :  { %1497 = vsyncadd [#allocation4], 4294966784 }
  0x27   :  { %1498 = dma.done.wait [#allocation7], 6144  }
  0x28   :  { %1499 = vsyncadd [#allocation7], 4294961152  ;;  %v1350_v0 = vld [vmem:[#allocation6 + $0x78] sm:$0xff]   ;;  %v1353_v3 = vld [vmem:[#allocation6 + $0x70] sm:$0xff]   ;;  %vm94_vm0 = vsmask.f32 256 }
  0x29   :  { %v1351_v1 = vld [vmem:[#allocation6 + $0xb8] sm:$0xff]   ;;  %1224 = vmatprep.subr.bf16.mxu0 %v1350_v0  ;;  %v1354_v4 = vld [vmem:[#allocation6 + $0xb0] sm:$0xff]   ;;  %v1356_v6 = vld [vmem:[#allocation6 + $0x68] sm:$0xff]   ;;  %vm93_vm1 = vcmask 1040384   ;;  %vm102_vm3 = vsmask.f32 4368 }
  0x2a   :  { %v1352_v2 = vld [vmem:[#allocation6 + $0x38] sm:$0xff]   ;;  %1300 = vmatprep.subr.bf16.mxu1 %v1351_v1  ;;  %v1355_v5 = vld [vmem:[#allocation6 + $0x30] sm:$0xff]   ;;  %v1357_v7 = vld [vmem:[#allocation6 + $0xa8] sm:$0xff]   ;;  %vm140_vm4 = vcmask 1043456   ;;  %vm141_vm5 = vsmask.f32 7938 }
  0x2b   :  { %1225 = vmatpush3.bf16.msra.mxu0 %v1352_v2  ;;  %1301 = vmatpush3.bf16.msra.mxu1 %v1351_v1  ;;  %v1358_v8 = vld [vmem:[#allocation6 + $0x28] sm:$0xff]   ;;  %v1359_v9 = vld [vmem:[#allocation6 + $0x60] sm:$0xff]   ;;  %v1362_v12 = vld [vmem:[#allocation6 + $0x58] sm:$0xff]   ;;  %vm151_vm6 = vsmask.f32 3328  ;;  %vm185_vm13 = vcmask 1043459  }
  0x2c   :  { %1226 = vmatprep.subr.bf16.mxu0 %v1353_v3  ;;  %1302 = vmatprep.subr.bf16.mxu1 %v1354_v4  ;;  %v1360_v10 = vld [vmem:[#allocation6 + $0xa0] sm:$0xff]   ;;  %v1363_v13 = vld [vmem:[#allocation6 + $0x98] sm:$0xff]   ;;  %v1365_v15 = vld [vmem:[#allocation6 + $0x50] sm:$0xff]   ;;  %vm152_vm7 = vsmask.f32 7440  ;;  %s1509_s0 = smov 16  }
  0x2d   :  { %v1361_v11 = vld [vmem:[#allocation6 + $0x20] sm:$0xff]   ;;  %v1364_v14 = vld [vmem:[#allocation6 + $0x18] sm:$0xff]   ;;  %v1366_v16 = vld [vmem:[#allocation6 + $0x90] sm:$0xff]   ;;  %vm186_vm10 = vsmask.f32 7950  ;;  %s1510_s2 = smov 32  }
  0x2e   :  { %vm1569_vm2 = vmand %vm93_vm1, %vm94_vm0  ;;  %v1367_v18 = vld [vmem:[#allocation6 + $0x10] sm:$0xff]   ;;  %v1368_v19 = vld [vmem:[#allocation6 + $0x48] sm:$0xff]  }
  0x2f   :  { %1227 = vmatpush3.bf16.msra.mxu0 %v1355_v5  ;;  %1303 = vmatpush3.bf16.msra.mxu1 %v1354_v4  ;;  %v1369_v20 = vld [vmem:[#allocation6 + $0x88] sm:$0xff]   ;;  %v1371_v22 = vld [vmem:[#allocation6 + $0x40] sm:$0xff]   ;;  %v1577_v25 = vld [vmem:[#allocation3 + $0x10] sm:$0xff] }
  0x30   :  { %1228 = vmatprep.subr.bf16.mxu0 %v1356_v6  ;;  %1304 = vmatprep.subr.bf16.mxu1 %v1357_v7  ;;  %v1370_v21 = vld [vmem:[#allocation6 + $0x8] sm:$0xff]   ;;  %v1573_v23 = vld [vmem:[#allocation3] sm:$0xff]  ;;  %v1579_v27 = vld [vmem:[#allocation3 + $0x18] sm:$0xff]  ;;  %v1587_v30 = vpack.c.bf16 %v1577_v25, %v1577_v25 }
  0x31   :  { %v1575_v24 = vld [vmem:[#allocation3 + $0x8] sm:$0xff]  ;;  %v1372_v26 = vld [vmem:[#allocation6 + $0x80] sm:$0xff]   ;;  %v1216_v28 = vpack.c.bf16 %v1573_v23, %v1573_v23  ;;  %v96_v31 = vld [vmem:[#allocation2] sm:$0x1]  ;;  %v1219_v33 = vpack.c.bf16 %v1579_v27, %v1579_v27 }
  0x32   :  { %v1217_v29 = vpack.c.bf16 %v1575_v24, %v1575_v24  ;;  %v1373_v32 = vld [vmem:[#allocation6] sm:$0xff]   ;;  %v97_v34 = vsel %vm1569_vm2, 0, %v96_v31  ;;  %91 = vst [vmem:[#allocation2 + $0x1c] sm:$0xf] %v1587_v30  ;;  %v121_v39 = vshrl.u32 %v1587_v30, 16  ;;  %v124_v42 = vshll.u32 %v1587_v30, 16  ;;  %vm1598_vm8 = vmor %vm94_vm0, %vm102_vm3 }
  0x33   :  { %1229 = vmatpush3.bf16.msra.mxu0 %v1358_v8  ;;  %1305 = vmatpush3.bf16.msra.mxu1 %v1357_v7  ;;  %89 = vst [vmem:[#allocation2 + $0x4] sm:$0xf] %v1216_v28  ;;  %98 = vst [vmem:[#allocation2] sm:$0x1] %v97_v34  ;;  %v105_v35 = vshrl.u32 %v1216_v28, 16  ;;  %v108_v36 = vshll.u32 %v1216_v28, 16 }
  0x34   :  { %1230 = vmatprep.subr.bf16.mxu0 %v1359_v9  ;;  %1306 = vmatprep.subr.bf16.mxu1 %v1360_v10  ;;  %90 = vst [vmem:[#allocation2 + $0x10] sm:$0xf] %v1217_v29  ;;  %v113_v37 = vshrl.u32 %v1217_v29, 16  ;;  %v116_v38 = vshll.u32 %v1217_v29, 16  ;;  %v129_v40 = vshrl.u32 %v1219_v33, 16  ;;  %v132_v41 = vshll.u32 %v1219_v33, 16  ;;  %vm1604_vm9 = vmand %vm140_vm4, %vm141_vm5 }
  0x35   :  { %92 = vst [vmem:[#allocation2 + $0x28] sm:$0xf] %v1219_v33  ;;  %v107_v43 = vrot.slane %v105_v35, 7  ;;  %v154_v45 = vrot.slane %v105_v35, 4  ;;  %v155_v46 = vrot.slane %v108_v36, 5  ;;  %v123_v49 = vrot.slane %v121_v39, 7  ;;  %vm1610_vm11 = vmor %vm151_vm6, %vm152_vm7 }
  0x36   :  { %v115_v44 = vrot.slane %v113_v37, 7  ;;  %v99_v47 = vld [vmem:[#allocation2 + $0x18] sm:$0x1]  ;;  %v131_v50 = vrot.slane %v129_v40, 7  ;;  %v158_v51 = vrot.slane %v116_v38, 5  ;;  %v160_v52 = vrot.slane %v113_v37, 4  ;;  %vm1618_vm12 = vmand %vm140_vm4, %vm151_vm6 }
  0x37   :  { %1231 = vmatpush3.bf16.msra.mxu0 %v1361_v11  ;;  %1307 = vmatpush3.bf16.msra.mxu1 %v1360_v10  ;;  %v110_v53 = vor.u32 %v108_v36, %v107_v43  ;;  %v111_v54 = vrot.slane %v107_v43, 4  ;;  %v156_v57 = vor.u32 %v155_v46, %v154_v45  ;;  %v178_v58 = vld [vmem:[#allocation2 + $0x14] sm:$0xf]  ;;  %v127_v59 = vrot.slane %v123_v49, 4  ;;  %vm1637_vm14 = vmand %vm185_vm13, %vm186_vm10 }
  0x38   :  { %1232 = vmatprep.subr.bf16.mxu0 %v1362_v12  ;;  %1308 = vmatprep.subr.bf16.mxu1 %v1363_v13  ;;  %v118_v55 = vor.u32 %v116_v38, %v115_v44  ;;  %v134_v60 = vor.u32 %v132_v41, %v131_v50  ;;  %v161_v62 = vor.u32 %v160_v52, %v158_v51  ;;  %v163_v63 = vrot.slane %v121_v39, 4 }
  0x39   :  { %v157_v1 = vrot.slane %v156_v57, 4  ;;  %v164_v3 = vrot.slane %v124_v42, 5  ;;  %v167_v4 = vrot.slane %v132_v41, 5  ;;  %v169_v8 = vrot.slane %v129_v40, 4 }
  0x3a   :  { %v119_v0 = vsel %vm1598_vm8, %v111_v54, %v118_v55  ;;  %v135_v5 = vsel %vm1598_vm8, %v127_v59, %v134_v60  ;;  %v143_v6 = vld [vmem:[#allocation2] sm:$0xf]  ;;  %v162_v7 = vrot.slane %v161_v62, 4  ;;  %v100_v9 = vsel %vm1569_vm2, 0, %v99_v47 }
  0x3b   :  { %1233 = vmatpush3.bf16.msra.mxu0 %v1364_v14  ;;  %1309 = vmatpush3.bf16.msra.mxu1 %v1363_v13  ;;  %146 = vst [vmem:[#allocation2 + $0xc] sm:$0xf] %v119_v0  ;;  %v144_v10 = vsel %vm1604_vm9, %v110_v53, %v143_v6  ;;  %150 = vst [vmem:[#allocation2 + $0x24] sm:$0xf] %v135_v5  ;;  %v159_v11 = vsel %vm1610_vm11, %v157_v1, %v158_v51  ;;  %v182_v13 = vld [vmem:[#allocation2 + $0x2c] sm:$0xf] }
  0x3c   :  { %1234 = vmatprep.subr.bf16.mxu0 %v1365_v15  ;;  %1310 = vmatprep.subr.bf16.mxu1 %v1366_v16  ;;  %v165_v12 = vor.u32 %v164_v3, %v163_v63  ;;  %101 = vst [vmem:[#allocation2 + $0x18] sm:$0x1] %v100_v9  ;;  %145 = vst [vmem:[#allocation2] sm:$0xf] %v144_v10  ;;  %v179_v14 = vsel %vm1618_vm12, %v162_v7, %v178_v58  ;;  %v1374_v30 = vld [vmem:[#allocation2 + $0x4] ss:$12 sps:$4 sm:$0xff]  }
  0x3d   :  { %176 = vst [vmem:[#allocation2 + $0x8] sm:$0xf] %v159_v11  ;;  %v170_v15 = vor.u32 %v169_v8, %v167_v4  ;;  %180 = vst [vmem:[#allocation2 + $0x14] sm:$0xf] %v179_v14  ;;  %458 = vmatprep.mubr.bf16.mxu0 %v1374_v30  ;;  %v1378_v41 = vld [vmem:[#allocation2 + $0x1c] ss:$12 sps:$4 sm:$0xff]  }
  0x3f   :  { %1235 = vmatpush3.bf16.msra.mxu0 %v1367_v18  ;;  %1311 = vmatpush3.bf16.msra.mxu1 %v1366_v16  ;;  %v166_v16 = vrot.slane %v165_v12, 4  ;;  %v171_v18 = vrot.slane %v170_v15, 4 }
  0x40   :  { %1236 = vmatprep.subr.bf16.mxu0 %v1368_v19  ;;  %1312 = vmatprep.subr.bf16.mxu1 %v1369_v20 }
  0x41   :  { %v168_v19 = vsel %vm1610_vm11, %v166_v16, %v167_v4 }
  0x42   :  { %181 = vst [vmem:[#allocation2 + $0x20] sm:$0xf] %v168_v19  ;;  %v200_v39 = vld [vmem:[#allocation2 + $0x24] sm:$0xff] }
  0x43   :  { %1237 = vmatpush3.bf16.msra.mxu0 %v1370_v21  ;;  %1313 = vmatpush3.bf16.msra.mxu1 %v1369_v20  ;;  %v126_v20 = vor.u32 %v124_v42, %v123_v49  ;;  %v183_v21 = vsel %vm1618_vm12, %v171_v18, %v182_v13  ;;  %v147_v28 = vld [vmem:[#allocation2 + $0x18] sm:$0xf]  ;;  %v194_v29 = vld [vmem:[#allocation2] sm:$0xff] }
  0x44   :  { %1238 = vmatprep.subr.bf16.mxu0 %v1371_v22  ;;  %1314 = vmatprep.subr.bf16.mxu1 %v1372_v26  ;;  %v196_v22 = vld [vmem:[#allocation2 + $0xc] sm:$0xff]  ;;  %184 = vst [vmem:[#allocation2 + $0x2c] sm:$0xf] %v183_v21  ;;  %v625_v31 = vld [vmem:[#allocation2] sm:$0x1] }
  0x45   :  { %v626_v33 = vsel %vm1569_vm2, 0, %v625_v31  ;;  %v188_v34 = vld [vmem:[#allocation2 + $0x14] sm:$0x8]  ;;  %v1152_v35 = vcombine.low %v194_v29, %v196_v22 }
  0x46   :  { %627 = vst [vmem:[#allocation2] sm:$0x1] %v626_v33  ;;  %v189_v36 = vsel %vm1637_vm14, 0, %v188_v34 }
  0x47   :  { %1239 = vmatpush3.bf16.msra.mxu0 %v1373_v32  ;;  %1315 = vmatpush3.bf16.msra.mxu1 %v1372_v26  ;;  %v148_v32 = vsel %vm1604_vm9, %v126_v20, %v147_v28  ;;  %190 = vst [vmem:[#allocation2 + $0x14] sm:$0x8] %v189_v36 }
  0x48   :  { %149 = vst [vmem:[#allocation2 + $0x18] sm:$0xf] %v148_v32 }
  0x4a   :  { %459 = vmatmul.mubr.bf16.vlgmr.msra.gmra.mxu0 %v1152_v35 }
  0x4b   :  { %v191_v37 = vld [vmem:[#allocation2 + $0x2c] sm:$0x8]  ;;  %466 = vmatprep.mubr.bf16.mxu0 %v1378_v41 }
  0x4c   :  { %v192_v38 = vsel %vm1637_vm14, 0, %v191_v37 }
  0x4d   :  { %193 = vst [vmem:[#allocation2 + $0x2c] sm:$0x8] %v192_v38 }
  0x4e   :  { %v1376_v45 = vld [vmem:[#allocation2 + $0x8] ss:$12 sps:$4 sm:$0xff]  }
  0x4f   :  { %v198_v40 = vld [vmem:[#allocation2 + $0x18] sm:$0xff]  ;;  %1316 = vmatprep.mubr.bf16.mxu1 %v1376_v45 }
  0x50   :  { %v628_v42 = vld [vmem:[#allocation2 + $0x18] sm:$0x1]  ;;  %v1155_v44 = vcombine.low %v198_v40, %v200_v39 }
  0x51   :  { %v629_v43 = vsel %vm1569_vm2, 0, %v628_v42 }
  0x52   :  { %630 = vst [vmem:[#allocation2 + $0x18] sm:$0x1] %v629_v43  ;;  %467 = vmatmul.mubr.bf16.gmra.mxu0 %v1155_v44 }
  0x54   :  { %v1377_v46 = vld [vmem:[#allocation2 + $0x20] ss:$12 sps:$4 sm:$0xff]  }
  0x55   :  { %1317 = vmatmul.mubr.bf16.vlgmr.msra.gmra.mxu1 %v1377_v46  ;;  %v1380_v46 = vld [vmem:[#allocation8 + $0x78] sm:$0xff]  }
  0x56   :  { %1262 = vmatprep.subr.bf16.mxu0 %v1380_v46 }
 0x10a   :  { %v1240_v47 = vpop.f32.mrf.mxu0 }
 0x10c   :  { %v1241_v49 = vpop.f32.mrf.mxu0 }
 0x10d   :  { %v1242_v57 = vadd.f32 %v1241_v49, %v1240_v47  ;;  %v1381_v47 = vld [vmem:[#allocation8 + $0x38] sm:$0xff]   ;;  %v1382_v49 = vld [vmem:[#allocation8 + $0x70] sm:$0xff]  }
 0x10e   :  { %v1243_v50 = vpop.f32.mrf.mxu0  ;;  %1263 = vmatpush3.bf16.msra.mxu0 %v1381_v47 }
 0x10f   :  { %1264 = vmatprep.subr.bf16.mxu0 %v1382_v49 }
 0x110   :  { %v1244_v51 = vpop.f32.mrf.mxu0 }
 0x111   :  { %v1245_v60 = vadd.f32 %v1244_v51, %v1243_v50  ;;  %v1383_v50 = vld [vmem:[#allocation8 + $0x30] sm:$0xff]   ;;  %v1384_v51 = vld [vmem:[#allocation8 + $0x68] sm:$0xff]  }
 0x112   :  { %v1246_v52 = vpop.f32.mrf.mxu0  ;;  %1265 = vmatpush3.bf16.msra.mxu0 %v1383_v50 }
 0x113   :  { %1266 = vmatprep.subr.bf16.mxu0 %v1384_v51 }
 0x114   :  { %v1247_v53 = vpop.f32.mrf.mxu0 }
 0x115   :  { %v1318_v55 = vpop.f32.mrf.mxu1  ;;  %v1248_v58 = vadd.f32 %v1247_v53, %v1246_v52  ;;  %v1385_v52 = vld [vmem:[#allocation8 + $0x28] sm:$0xff]   ;;  %v1386_v53 = vld [vmem:[#allocation8 + $0xb8] sm:$0xff]  }
 0x116   :  { %v1249_v54 = vpop.f32.mrf.mxu0  ;;  %1267 = vmatpush3.bf16.msra.mxu0 %v1385_v52  ;;  %1320 = vmatprep.subr.bf16.mxu1 %v1386_v53 }
 0x117   :  { %v509_v59 = vpop.f32.mrf.mxu1  ;;  %v1653_v1 = vadd.f32 %v1318_v55, %v1248_v58  ;;  %v1388_v55 = vld [vmem:[#allocation8 + $0x20] sm:$0xff]   ;;  %1321 = vmatpush3.bf16.msra.mxu1 %v1386_v53  ;;  %v1390_v58 = vld [vmem:[#allocation8 + $0x58] sm:$0xff]  }
 0x118   :  { %v1250_v17 = vpop.f32.mrf.mxu0  ;;  %v1651_v0 = vadd.f32 %v1242_v57, %v509_v59  ;;  %v1389_v57 = vld [vmem:[#allocation8 + $0xb0] sm:$0xff]   ;;  %v1392_v59 = vld [vmem:[#allocation8 + $0xa8] sm:$0xff]  }
 0x119   :  { %v1251_v62 = vadd.f32 %v1250_v17, %v1249_v54  ;;  %v1319_v63 = vpop.f32.mrf.mxu1  ;;  %v537_v9 = vmul.f32 %v1653_v1, %v1653_v1  ;;  %v1387_v54 = vld [vmem:[#allocation8 + $0x60] sm:$0xff]   ;;  %1322 = vmatprep.subr.bf16.mxu1 %v1389_v57  ;;  %v1391_v17 = vld [vmem:[#allocation8 + $0x18] sm:$0xff]  }
 0x11a   :  { %v535_v6 = vmul.f32 %v1651_v0, %v1651_v0  ;;  %1268 = vmatprep.subr.bf16.mxu0 %v1387_v54 }
 0x11b   :  { %v512_v3 = vpop.f32.mrf.mxu1  ;;  %v1657_v5 = vadd.f32 %v1319_v63, %v1251_v62  ;;  %1269 = vmatpush3.bf16.msra.mxu0 %v1388_v55  ;;  %1323 = vmatpush3.bf16.msra.mxu1 %v1389_v57  ;;  %v1394_v62 = vld [vmem:[#allocation8 + $0x10] sm:$0xff]   ;;  %v1395_v63 = vld [vmem:[#allocation8 + $0xa0] sm:$0xff]  }
 0x11c   :  { %v1655_v4 = vadd.f32 %v1245_v60, %v512_v3  ;;  %1270 = vmatprep.subr.bf16.mxu0 %v1390_v58  ;;  %v1393_v60 = vld [vmem:[#allocation8 + $0x50] sm:$0xff]   ;;  %1324 = vmatprep.subr.bf16.mxu1 %v1392_v59  ;;  %v1396_v3 = vld [vmem:[#allocation8 + $0x48] sm:$0xff]  }
 0x11d   :  { %v538_v12 = vmul.f32 %v1657_v5, %v1657_v5 }
 0x11e   :  { %v526_v7 = vadd.f32 %v1655_v4, %v1651_v0  ;;  %v536_v8 = vmul.f32 %v1655_v4, %v1655_v4 }
 0x11f   :  { %1271 = vmatpush3.bf16.msra.mxu0 %v1391_v17  ;;  %1325 = vmatpush3.bf16.msra.mxu1 %v1392_v59 }
 0x120   :  { %v539_v10 = vadd.f32 %v536_v8, %v535_v6  ;;  %v527_v11 = vadd.f32 %v526_v7, %v1653_v1  ;;  %1272 = vmatprep.subr.bf16.mxu0 %v1393_v60  ;;  %1326 = vmatprep.subr.bf16.mxu1 %v1395_v63  ;;  %v1397_v6 = vld [vmem:[#allocation8 + $0x8] sm:$0xff]   ;;  %v1398_v7 = vld [vmem:[#allocation8 + $0x98] sm:$0xff]   ;;  %v1399_v8 = vld [vmem:[#allocation8 + $0x40] sm:$0xff]  }
 0x122   :  { %v540_v13 = vadd.f32 %v539_v10, %v537_v9  ;;  %v528_v14 = vadd.f32 %v527_v11, %v1657_v5  ;;  %v1400_v9 = vld [vmem:[#allocation8] sm:$0xff]   ;;  %v1404_v10 = vld [vmem:[#allocation8 + $0x90] sm:$0xff]   ;;  %v1407_v11 = vld [vmem:[#allocation8 + $0x88] sm:$0xff]  }
 0x123   :  { %1273 = vmatpush3.bf16.msra.mxu0 %v1394_v62  ;;  %1327 = vmatpush3.bf16.msra.mxu1 %v1395_v63 }
 0x124   :  { %v529_v15 = vrot.slane %v528_v14, 4  ;;  %v541_v16 = vadd.f32 %v540_v13, %v538_v12  ;;  %1274 = vmatprep.subr.bf16.mxu0 %v1396_v3  ;;  %1328 = vmatprep.subr.bf16.mxu1 %v1398_v7  ;;  %v1408_v12 = vld [vmem:[#allocation8 + $0x80] sm:$0xff]  }
 0x126   :  { %v530_v18 = vadd.f32 %v529_v15, %v528_v14  ;;  %v542_v19 = vrot.slane %v541_v16, 4 }
 0x127   :  { %1275 = vmatpush3.bf16.msra.mxu0 %v1397_v6  ;;  %1329 = vmatpush3.bf16.msra.mxu1 %v1398_v7  ;;  %v667_v6 = vld [vmem:[#allocation2] sm:$0xf] }
 0x128   :  { %v531_v20 = vrot.slane %v530_v18, 2  ;;  %v543_v21 = vadd.f32 %v542_v19, %v541_v16  ;;  %1276 = vmatprep.subr.bf16.mxu0 %v1399_v8  ;;  %1330 = vmatprep.subr.bf16.mxu1 %v1404_v10 }
 0x12a   :  { %v532_v22 = vadd.f32 %v531_v20, %v530_v18  ;;  %v544_v28 = vrot.slane %v543_v21, 2 }
 0x12b   :  { %1277 = vmatpush3.bf16.msra.mxu0 %v1400_v9  ;;  %1331 = vmatpush3.bf16.msra.mxu1 %v1404_v10 }
 0x12c   :  { %v533_v29 = vrot.slane %v532_v22, 1  ;;  %v545_v30 = vadd.f32 %v544_v28, %v543_v21  ;;  %1332 = vmatprep.subr.bf16.mxu1 %v1407_v11  ;;  %v582_v28 = vlaneseq }
 0x12e   :  { %v534_v31 = vadd.f32 %v533_v29, %v532_v22  ;;  %v546_v32 = vrot.slane %v545_v30, 1  ;;  %v583_v29 = vshrl.u32 %v582_v28, 7 }
 0x12f   :  { %1333 = vmatpush3.bf16.msra.mxu1 %v1407_v11  ;;  %v671_v11 = vld [vmem:[#allocation2 + $0x18] sm:$0xf] }
 0x130   :  { %548 = vrot.lane.b32.xlu0 %v534_v31, %s1507_s12  ;;  %v547_v33 = vadd.f32 %v546_v32, %v545_v30  ;;  %1334 = vmatprep.subr.bf16.mxu1 %v1408_v12  ;;  %v524_v30 = vld [vmem:[%s1754_s3] sm:$0x1] }
 0x133   :  { %1335 = vmatpush3.bf16.msra.mxu1 %v1408_v12 }
 0x134   :  { %551 = vrot.lane.b32.xlu0 %v547_v33, %s1507_s12 }
 0x1a2   :  { %v549_v34 = vpop.permute.xlu0 %548 }
 0x1a3   :  { %v550_v35 = vadd.f32 %v549_v34, %v534_v31  ;;  %v1682_v31 = vsub.s32 0, %v583_v29  ;;  %v525_v34 = vld [vmem:[%s1755_s4] sm:$0x1] }
 0x1a5   :  { %554 = vrot.lane.b32.xlu1 %v550_v35, %s1509_s0 }
 0x1a6   :  { %v552_v36 = vpop.permute.xlu0 %551 }
 0x1a7   :  { %v553_v37 = vadd.f32 %v552_v36, %v547_v33 }
 0x1a9   :  { %557 = vrot.lane.b32.xlu1 %v553_v37, %s1509_s0 }
 0x217   :  { %v555_v38 = vpop.permute.xlu1 %554 }
 0x218   :  { %v556_v39 = vadd.f32 %v555_v38, %v550_v35 }
 0x21a   :  { %560 = vrot.lane.b32.xlu0 %v556_v39, %s1510_s2 }
 0x21b   :  { %v558_v40 = vpop.permute.xlu1 %557 }
 0x21c   :  { %v559_v41 = vadd.f32 %v558_v40, %v553_v37 }
 0x21e   :  { %563 = vrot.lane.b32.xlu1 %v559_v41, %s1510_s2 }
 0x28c   :  { %v561_v42 = vpop.permute.xlu0 %560 }
 0x28d   :  { %v562_v43 = vadd.f32 %v561_v42, %v556_v39 }
 0x28f   :  { %566 = vrot.lane.b32.xlu0 %v562_v43, %s1503_s27 }
 0x290   :  { %v564_v44 = vpop.permute.xlu1 %563 }
 0x291   :  { %v565_v45 = vadd.f32 %v564_v44, %v559_v41 }
 0x293   :  { %569 = vrot.lane.b32.xlu1 %v565_v45, %s1503_s27 }
 0x301   :  { %v567_v13 = vpop.permute.xlu0 %566 }
 0x302   :  { %v568_v14 = vadd.f32 %v567_v13, %v562_v43 }
 0x304   :  { %v572_v15 = vmul.f32 0.001953125, %v568_v14 }
 0x305   :  { %v570_v16 = vpop.permute.xlu1 %569 }
 0x306   :  { %v571_v18 = vadd.f32 %v570_v16, %v565_v45  ;;  %v574_v19 = vmul.f32 %v572_v15, %v572_v15 }
 0x308   :  { %v573_v20 = vmul.f32 0.001953125, %v571_v18 }
 0x30a   :  { %v575_v21 = vsub.f32 %v573_v20, %v574_v19 }
 0x30c   :  { %v576_v22 = vadd.f32 1e-05, %v575_v21  ;;  %v698_v21 = vld [vmem:[#allocation2 + $0x14] sm:$0xf] }
 0x30e   :  { %1412 = vrsqrt.f32 %v576_v22 }
 0x31b   :  { %v1413_v32 = vpop.eup %1412 }
 0x31c   :  { %v578_v33 = vmul.f32 %v1413_v32, %v524_v30 }
 0x31e   :  { %v579_v35 = vmul.f32 %v578_v33, %v572_v15  ;;  %v585_v36 = vrot.slane %v578_v33, %v1682_v31 }
 0x320   :  { %v580_v37 = vsub.f32 %v525_v34, %v579_v35  ;;  %v587_v38 = vmul.f32 %v585_v36, %v1651_v0  ;;  %v588_v39 = vmul.f32 %v585_v36, %v1655_v4  ;;  %v589_v40 = vmul.f32 %v585_v36, %v1653_v1 }
 0x321   :  { %v590_v41 = vmul.f32 %v585_v36, %v1657_v5 }
 0x322   :  { %v595_v42 = vrot.slane %v580_v37, %v1682_v31 }
 0x324   :  { %v597_v43 = vadd.f32 %v595_v42, %v587_v38  ;;  %v598_v44 = vadd.f32 %v595_v42, %v588_v39  ;;  %v599_v45 = vadd.f32 %v595_v42, %v589_v40  ;;  %v600_v46 = vadd.f32 %v595_v42, %v590_v41  ;;  %v702_v41 = vld [vmem:[#allocation2 + $0x2c] sm:$0xf] }
 0x326   :  { %v601_v47 = vmax.f32 %v597_v43, 0.0  ;;  %v602_v49 = vmax.f32 %v598_v44, 0.0  ;;  %v603_v50 = vmax.f32 %v599_v45, 0.0  ;;  %v604_v51 = vmax.f32 %v600_v46, 0.0 }
 0x328   :  { %v1220_v52 = vpack.c.bf16 %v601_v47, %v601_v47  ;;  %v1221_v53 = vpack.c.bf16 %v602_v49, %v602_v49  ;;  %v1222_v54 = vpack.c.bf16 %v603_v50, %v603_v50  ;;  %v1223_v0 = vpack.c.bf16 %v604_v51, %v604_v51 }
 0x32a   :  { %v632_v55 = vshrl.u32 %v1220_v52, 16  ;;  %v635_v4 = vshll.u32 %v1220_v52, 16  ;;  %v640_v57 = vshrl.u32 %v1221_v53, 16  ;;  %v643_v1 = vshll.u32 %v1221_v53, 16  ;;  %621 = vst [vmem:[#allocation2 + $0x4] sm:$0xf] %v1220_v52 }
 0x32b   :  { %622 = vst [vmem:[#allocation2 + $0x10] sm:$0xf] %v1221_v53  ;;  %623 = vst [vmem:[#allocation2 + $0x1c] sm:$0xf] %v1222_v54  ;;  %v648_v5 = vshrl.u32 %v1222_v54, 16  ;;  %v651_v58 = vshll.u32 %v1222_v54, 16 }
 0x32c   :  { %624 = vst [vmem:[#allocation2 + $0x28] sm:$0xf] %v1223_v0  ;;  %v656_v17 = vshrl.u32 %v1223_v0, 16  ;;  %v659_v59 = vshll.u32 %v1223_v0, 16  ;;  %v634_v60 = vrot.slane %v632_v55, 7  ;;  %v642_v62 = vrot.slane %v640_v57, 7 }
 0x32d   :  { %v675_v63 = vrot.slane %v632_v55, 4  ;;  %v676_v3 = vrot.slane %v635_v4, 5  ;;  %v650_v7 = vrot.slane %v648_v5, 7  ;;  %v679_v9 = vrot.slane %v643_v1, 5 }
 0x32e   :  { %v658_v8 = vrot.slane %v656_v17, 7  ;;  %v681_v10 = vrot.slane %v640_v57, 4  ;;  %v637_v12 = vor.u32 %v635_v4, %v634_v60  ;;  %v638_v13 = vrot.slane %v634_v60, 4 }
 0x32f   :  { %v645_v14 = vor.u32 %v643_v1, %v642_v62  ;;  %v677_v15 = vor.u32 %v676_v3, %v675_v63  ;;  %v653_v16 = vor.u32 %v651_v58, %v650_v7  ;;  %v654_v18 = vrot.slane %v650_v7, 4 }
 0x330   :  { %v661_v19 = vor.u32 %v659_v59, %v658_v8  ;;  %v682_v20 = vor.u32 %v681_v10, %v679_v9  ;;  %v668_v22 = vsel %vm1604_vm9, %v637_v12, %v667_v6  ;;  %v684_v29 = vrot.slane %v648_v5, 4 }
 0x331   :  { %v678_v28 = vrot.slane %v677_v15, 4  ;;  %v685_v30 = vrot.slane %v651_v58, 5  ;;  %v672_v32 = vsel %vm1604_vm9, %v653_v16, %v671_v11  ;;  %v688_v34 = vrot.slane %v659_v59, 5  ;;  %669 = vst [vmem:[#allocation2] sm:$0xf] %v668_v22 }
 0x332   :  { %v683_v33 = vrot.slane %v682_v20, 4  ;;  %v690_v35 = vrot.slane %v656_v17, 4  ;;  %673 = vst [vmem:[#allocation2 + $0x18] sm:$0xf] %v672_v32  ;;  %v646_v37 = vsel %vm1598_vm8, %v638_v13, %v645_v14  ;;  %v662_v38 = vsel %vm1598_vm8, %v654_v18, %v661_v19  ;;  %v1403_v46 = vld [vmem:[#allocation2 + $0x4] ss:$12 sps:$4 sm:$0xff]  }
 0x333   :  { %v686_v36 = vor.u32 %v685_v30, %v684_v29  ;;  %v680_v39 = vsel %vm1610_vm11, %v678_v28, %v679_v9  ;;  %670 = vst [vmem:[#allocation2 + $0xc] sm:$0xf] %v646_v37  ;;  %674 = vst [vmem:[#allocation2 + $0x24] sm:$0xf] %v662_v38  ;;  %975 = vmatprep.mubr.bf16.mxu0 %v1403_v46  ;;  %v1405_v47 = vld [vmem:[#allocation2 + $0x1c] ss:$12 sps:$4 sm:$0xff]  }
 0x334   :  { %v691_v40 = vor.u32 %v690_v35, %v688_v34  ;;  %v699_v56 = vsel %vm1618_vm12, %v683_v33, %v698_v21  ;;  %697 = vst [vmem:[#allocation2 + $0x8] sm:$0xf] %v680_v39 }
 0x335   :  { %v687_v42 = vrot.slane %v686_v36, 4  ;;  %700 = vst [vmem:[#allocation2 + $0x14] sm:$0xf] %v699_v56 }
 0x336   :  { %v692_v43 = vrot.slane %v691_v40, 4 }
 0x337   :  { %v689_v44 = vsel %vm1610_vm11, %v687_v42, %v688_v34 }
 0x338   :  { %v703_v48 = vsel %vm1618_vm12, %v692_v43, %v702_v41  ;;  %701 = vst [vmem:[#allocation2 + $0x20] sm:$0xf] %v689_v44 }
 0x339   :  { %704 = vst [vmem:[#allocation2 + $0x2c] sm:$0xf] %v703_v48 }
 0x33a   :  { %v1401_v45 = vld [vmem:[#allocation2] ss:$12 sps:$4 sm:$0xff]   ;;  %v1409_v2 = vld [vmem:[#allocation2 + $0x18] ss:$12 sps:$4 sm:$0xff]  }
 0x33b   :  { %976 = vmatmul.mubr.bf16.vlgmr.msra.gmra.mxu0 %v1401_v45 }
 0x33c   :  { %v705_v49 = vld [vmem:[#allocation2 + $0x14] sm:$0x8]  ;;  %983 = vmatprep.mubr.bf16.mxu0 %v1405_v47 }
 0x33d   :  { %v706_v50 = vsel %vm1637_vm14, 0, %v705_v49 }
 0x33e   :  { %707 = vst [vmem:[#allocation2 + $0x14] sm:$0x8] %v706_v50 }
 0x340   :  { %v708_v51 = vld [vmem:[#allocation2 + $0x2c] sm:$0x8] }
 0x341   :  { %v709_v61 = vsel %vm1637_vm14, 0, %v708_v51 }
 0x342   :  { %710 = vst [vmem:[#allocation2 + $0x2c] sm:$0x8] %v709_v61 }
 0x343   :  { %984 = vmatmul.mubr.bf16.gmra.mxu0 %v1409_v2 }
 0x345   :  { %v1410_v52 = vld [vmem:[#allocation2 + $0x8] ss:$12 sps:$4 sm:$0xff]  }
 0x346   :  { %1336 = vmatprep.mubr.bf16.mxu1 %v1410_v52 }
 0x349   :  { %v1411_v53 = vld [vmem:[#allocation2 + $0x20] ss:$12 sps:$4 sm:$0xff]  }
 0x34a   :  { %1337 = vmatmul.mubr.bf16.vlgmr.msra.gmra.mxu1 %v1411_v53 }
 0x3fb   :  { %v1278_v54 = vpop.f32.mrf.mxu0 }
 0x3fd   :  { %v1279_v0 = vpop.f32.mrf.mxu0 }
 0x3fe   :  { %v1280_v60 = vadd.f32 %v1279_v0, %v1278_v54 }
 0x3ff   :  { %v1281_v55 = vpop.f32.mrf.mxu0 }
 0x401   :  { %v1282_v4 = vpop.f32.mrf.mxu0 }
 0x402   :  { %v1283_v63 = vadd.f32 %v1282_v4, %v1281_v55 }
 0x403   :  { %v1284_v57 = vpop.f32.mrf.mxu0 }
 0x405   :  { %v1285_v1 = vpop.f32.mrf.mxu0 }
 0x406   :  { %v1286_v26 = vadd.f32 %v1285_v1, %v1284_v57  ;;  %v1041_v57 = vld [vmem:[%s1756_s5] sm:$0x1]  ;;  %s1511_s5 = smov [#allocation9]  }
 0x407   :  { %v1287_v5 = vpop.f32.mrf.mxu0  ;;  %s1135_s25 = sshll.u32 %s1511_s5, 4  ;;  %s1136_s25 = int_to_ptr.vmem [resolvable:$true] %s1135_s25 }
 0x408   :  { %p1481_p2 = scmp.lt.s32.totalorder %s1136_s25, %s1136_s25 }
 0x409   :  { %v1288_v59 = vpop.f32.mrf.mxu0 }
 0x40a   :  { %v1338_v58 = vpop.f32.mrf.mxu1  ;;  %v1289_v6 = vadd.f32 %v1288_v59, %v1287_v5 }
 0x40b   :  { %v1715_v8 = vadd.f32 %v1338_v58, %v1286_v26  ;;  %v1042_v58 = vld [vmem:[%s1757_s6] sm:$0x1]  ;;  %s1476_s6 = scalar_lea.vmem %s1136_s25, 512 }
 0x40c   :  { %v1026_v17 = vpop.f32.mrf.mxu1  ;;  %p1477_p1 = scmp.ne.s32.totalorder %s1136_s25, %s1476_s6  ;;  %p1482_p3 = scmp.lt.s32.totalorder %s1476_s6, %s1476_s6 }
 0x40d   :  { %v1713_v3 = vadd.f32 %v1280_v60, %v1026_v17  ;;  %v1054_v14 = vmul.f32 %v1715_v8, %v1715_v8 }
 0x40e   :  { %v1339_v62 = vpop.f32.mrf.mxu1  ;;  %p1483_p4 = por %p1482_p3, %p1481_p2 }
 0x40f   :  { %v1052_v10 = vmul.f32 %v1713_v3, %v1713_v3  ;;  %v1038_v11 = vadd.f32 %v1339_v62, %v1289_v6 }
 0x410   :  { %v1029_v7 = vpop.f32.mrf.mxu1  ;;  %p1484_p5 = pnand %p1483_p4, %p1477_p1 }
 0x411   :  { %v1030_v9 = vadd.f32 %v1283_v63, %v1029_v7  ;;  %v1055_v18 = vmul.f32 %v1038_v11, %v1038_v11 }
 0x413   :  { %v1043_v12 = vadd.f32 %v1030_v9, %v1713_v3  ;;  %v1053_v13 = vmul.f32 %v1030_v9, %v1030_v9 }
 0x415   :  { %v1044_v15 = vadd.f32 %v1043_v12, %v1715_v8  ;;  %v1056_v16 = vadd.f32 %v1053_v13, %v1052_v10 }
 0x417   :  { %v1057_v19 = vadd.f32 %v1056_v16, %v1054_v14  ;;  %v1045_v20 = vadd.f32 %v1044_v15, %v1038_v11 }
 0x419   :  { %v1046_v21 = vrot.slane %v1045_v20, 4  ;;  %v1058_v22 = vadd.f32 %v1057_v19, %v1055_v18 }
 0x41b   :  { %v1047_v28 = vadd.f32 %v1046_v21, %v1045_v20  ;;  %v1059_v29 = vrot.slane %v1058_v22, 4 }
 0x41d   :  { %v1048_v30 = vrot.slane %v1047_v28, 2  ;;  %v1060_v32 = vadd.f32 %v1059_v29, %v1058_v22 }
 0x41f   :  { %v1049_v33 = vadd.f32 %v1048_v30, %v1047_v28  ;;  %v1061_v34 = vrot.slane %v1060_v32, 2 }
 0x421   :  { %v1050_v35 = vrot.slane %v1049_v33, 1  ;;  %v1062_v36 = vadd.f32 %v1061_v34, %v1060_v32 }
 0x423   :  { %v1051_v37 = vadd.f32 %v1050_v35, %v1049_v33  ;;  %v1063_v38 = vrot.slane %v1062_v36, 1 }
 0x425   :  { %1065 = vrot.lane.b32.xlu0 %v1051_v37, %s1507_s12  ;;  %v1064_v39 = vadd.f32 %v1063_v38, %v1062_v36 }
 0x427   :  { %1068 = vrot.lane.b32.xlu1 %v1064_v39, %s1507_s12 }
 0x497   :  { %v1066_v40 = vpop.permute.xlu0 %1065 }
 0x498   :  { %v1067_v56 = vadd.f32 %v1066_v40, %v1051_v37 }
 0x499   :  { %v1069_v41 = vpop.permute.xlu1 %1068 }
 0x49a   :  { %v1070_v42 = vadd.f32 %v1069_v41, %v1064_v39  ;;  %1071 = vrot.lane.b32.xlu0 %v1067_v56, %s1509_s0 }
 0x49c   :  { %1074 = vrot.lane.b32.xlu1 %v1070_v42, %s1509_s0 }
 0x50c   :  { %v1072_v43 = vpop.permute.xlu0 %1071 }
 0x50d   :  { %v1073_v44 = vadd.f32 %v1072_v43, %v1067_v56 }
 0x50e   :  { %v1075_v48 = vpop.permute.xlu1 %1074 }
 0x50f   :  { %v1076_v45 = vadd.f32 %v1075_v48, %v1070_v42  ;;  %1077 = vrot.lane.b32.xlu0 %v1073_v44, %s1510_s2 }
 0x511   :  { %1080 = vrot.lane.b32.xlu1 %v1076_v45, %s1510_s2 }
 0x581   :  { %v1078_v46 = vpop.permute.xlu0 %1077 }
 0x582   :  { %v1079_v47 = vadd.f32 %v1078_v46, %v1073_v44 }
 0x583   :  { %v1081_v49 = vpop.permute.xlu1 %1080 }
 0x584   :  { %v1082_v50 = vadd.f32 %v1081_v49, %v1076_v45  ;;  %1083 = vrot.lane.b32.xlu0 %v1079_v47, %s1503_s27 }
 0x586   :  { %1086 = vrot.lane.b32.xlu1 %v1082_v50, %s1503_s27 }
 0x5f6   :  { %v1084_v51 = vpop.permute.xlu0 %1083 }
 0x5f7   :  { %v1085_v61 = vadd.f32 %v1084_v51, %v1079_v47 }
 0x5f8   :  { %v1087_v2 = vpop.permute.xlu1 %1086 }
 0x5f9   :  { %v1089_v52 = vmul.f32 0.001953125, %v1085_v61  ;;  %v1088_v53 = vadd.f32 %v1087_v2, %v1082_v50 }
 0x5fb   :  { %v1091_v54 = vmul.f32 %v1089_v52, %v1089_v52  ;;  %v1090_v0 = vmul.f32 0.001953125, %v1088_v53 }
 0x5fd   :  { %v1092_v55 = vsub.f32 %v1090_v0, %v1091_v54 }
 0x5ff   :  { %v1093_v4 = vadd.f32 1e-05, %v1092_v55 }
 0x601   :  { %1414 = vrsqrt.f32 %v1093_v4 }
 0x60e   :  { %v1415_v1 = vpop.eup %1414 }
 0x60f   :  { %v1095_v5 = vmul.f32 %v1415_v1, %v1041_v57 }
 0x611   :  { %v1096_v17 = vmul.f32 %v1095_v5, %v1089_v52  ;;  %v1102_v59 = vrot.slane %v1095_v5, %v1682_v31 }
 0x613   :  { %v1097_v60 = vsub.f32 %v1042_v58, %v1096_v17  ;;  %v1104_v26 = vmul.f32 %v1102_v59, %v1713_v3  ;;  %v1105_v62 = vmul.f32 %v1102_v59, %v1030_v9  ;;  %v1106_v63 = vmul.f32 %v1102_v59, %v1715_v8 }
 0x614   :  { %v1107_v6 = vmul.f32 %v1102_v59, %v1038_v11 }
 0x615   :  { %v1112_v7 = vrot.slane %v1097_v60, %v1682_v31 }
 0x617   :  { %v1114_v10 = vadd.f32 %v1112_v7, %v1104_v26  ;;  %v1115_v12 = vadd.f32 %v1112_v7, %v1105_v62  ;;  %v1116_v13 = vadd.f32 %v1112_v7, %v1106_v63  ;;  %v1117_v14 = vadd.f32 %v1112_v7, %v1107_v6 }
 0x619   :  { %v1118_v15 = vadd.f32 %v1114_v10, %v1573_v23  ;;  %v1119_v16 = vadd.f32 %v1115_v12, %v1575_v24  ;;  %v1120_v18 = vadd.f32 %v1116_v13, %v1577_v25  ;;  %v1121_v3 = vadd.f32 %v1117_v14, %v1579_v27 }
 0x61b   :  { %v1122_v9 = vmax.f32 %v1118_v15, 0.0  ;;  %v1123_v19 = vmax.f32 %v1119_v16, 0.0  ;;  %v1124_v8 = vmax.f32 %v1120_v18, 0.0  ;;  %v1125_v11 = vmax.f32 %v1121_v3, 0.0 }
 0x61d   :  { %1126 = vst [vmem:[#allocation9] sm:$0xff] %v1122_v9  ;;  %1127 = vst [vmem:[#allocation9 + $0x8] sm:$0xff] %v1123_v19 }
 0x61e   :  { %1128 = vst [vmem:[#allocation9 + $0x10] sm:$0xff] %v1124_v8  ;;  %1129 = vst [vmem:[#allocation9 + $0x18] sm:$0xff] %v1125_v11 }
 0x61f   :  { %1487 = shalt.err (!%p1484_p5)
}
 0x620   :  { %1141 = dma.vmem_to_hbm [thread:$0]  %s1136_s25, 512, %s1758_s7, [#allocation5], %s1506_s11, %s1506_s11, %s1507_s12  }
 0x621   :  { %1500 = dma.done.wait [#allocation5], 512  }
 0x622   :  { %1501 = vsyncadd [#allocation5], 4294966784 }
 0x623   :  { %1145 = vsyncpa [#allocation4], 1 }
 0x624   :  { %1146 = vsyncpa [#allocation7], 1 }
 0x625   :  { %1147 = vsyncpa [#allocation5], 1 }

</bundles_post_ra>
